<compile_context>
chip_gen: v7x
topology: tpu7x:2x2x1
jax: 0.10.0
libtpu: 0.0.40
codegen_flags: <defaults>
</compile_context>

<pallas_src>
import functools

import jax
import jax.numpy as jnp
from jax import lax
from jax.experimental import pallas as pl
from jax.experimental.pallas import tpu as pltpu


def _lovasz_kernel(e_ref, g_ref, gts_ref, u_ref, l_ref, o_ref,
                   acc_ref, carry_ref, *, s, chunk):
    c = pl.program_id(1)
    last_c = pl.num_programs(1) - 1

    @pl.when(c == 0)
    def _():
        acc_ref[...] = jnp.zeros_like(acc_ref)
        carry_ref[...] = jnp.zeros_like(carry_ref)

    e = e_ref[0].astype(jnp.float32)        # (S, 128) sorted hinge errors
    g = g_ref[0].astype(jnp.float32)        # (S, 128) labels in sorted order
    gts = gts_ref[0].astype(jnp.float32)    # (1, 128) per-image positive count

    # Inclusive row-major cumsum of g over the (S, 128) chunk via the MXU.
    rowcum = jnp.dot(g, u_ref[...], preferred_element_type=jnp.float32)
    prev_rows = jnp.dot(l_ref[...], rowcum,
                        preferred_element_type=jnp.float32)[:, 127:128]
    local_cum = rowcum + prev_rows                     # (S, 128), this chunk
    cum = local_cum + carry_ref[...]                   # + carry of prev chunks

    row_i = lax.broadcasted_iota(jnp.int32, (s, 128), 0)
    col_i = lax.broadcasted_iota(jnp.int32, (s, 128), 1)
    idx_i = c * chunk + row_i * 128 + col_i            # global sorted position
    idx = idx_i.astype(jnp.float32)

    # Lovász gradient, fully elementwise from the inclusive cumsum.
    inter = gts - cum
    union = gts + (idx + 1.0) - cum
    jacc = 1.0 - inter / union

    cum_p = cum - g                                    # cumsum up to i-1
    inter_p = gts - cum_p
    union_p = gts + idx - cum_p
    jacc_prev = jnp.where(idx_i == 0, 0.0, 1.0 - inter_p / union_p)

    acc_ref[...] += jnp.maximum(e, 0.0) * (jacc - jacc_prev)

    # Carry the total label count of this chunk to the next chunk.
    carry_ref[...] = carry_ref[...] + local_cum[s - 1:s, 127:128]

    @pl.when(c == last_c)
    def _():
        # One sublane reduce per image; the 128 lanes are summed in the wrapper.
        o_ref[0] = jnp.sum(acc_ref[...], axis=0, keepdims=True)


def lovasz_hinge_loss(logits, target, *, block_rows=128):
    """Binary Lovász hinge loss with per_image=True (mean over batch)."""
    N = logits.shape[0]
    x = logits.reshape(N, -1)                          # squeeze(1) + flatten
    t = target.reshape(N, -1).astype(jnp.float32)
    HW = x.shape[-1]

    signs = 2.0 * t - 1.0
    errors = 1.0 - x * signs                           # promotes to f32

    # TODO(synk): descending per-image sort has no Pallas TPU equivalent; it is
    # done once in XLA (a single lax.sort carries the labels along).
    neg_sorted, g_sorted = lax.sort((-errors, t), dimension=-1,
                                    is_stable=True, num_keys=1)
    e_sorted = -neg_sorted
    gts = jnp.sum(t, axis=-1)                          # (N,) positives/image

    rows = pl.cdiv(HW, 128)
    s = max(8, min(block_rows, ((rows + 7) // 8) * 8))
    padded_rows = ((rows + s - 1) // s) * s
    pad = padded_rows * 128 - HW
    # Padded errors are <= 0 => relu()==0 => padding contributes nothing.
    e_sorted = jnp.pad(e_sorted, ((0, 0), (0, pad)), constant_values=-1.0)
    g_sorted = jnp.pad(g_sorted, ((0, 0), (0, pad)), constant_values=0.0)
    e3 = e_sorted.reshape(N, padded_rows, 128)
    g3 = g_sorted.reshape(N, padded_rows, 128).astype(jnp.float32)
    gts_b = jnp.broadcast_to(gts[:, None, None], (N, 1, 128)).astype(jnp.float32)

    # Cumsum helper matrices (constant block index -> fetched once).
    u_tri = (jnp.arange(128)[:, None] <= jnp.arange(128)[None, :]
             ).astype(jnp.float32)                     # (128,128) incl. upper
    l_tri = (jnp.arange(s)[None, :] < jnp.arange(s)[:, None]
             ).astype(jnp.float32)                     # (S,S) strict lower

    k = padded_rows // s
    chunk = s * 128
    kernel = functools.partial(_lovasz_kernel, s=s, chunk=chunk)

    out = pl.pallas_call(
        kernel,
        out_shape=jax.ShapeDtypeStruct((N, 1, 128), jnp.float32),
        grid_spec=pltpu.PrefetchScalarGridSpec(
            num_scalar_prefetch=0,
            grid=(N, k),
            in_specs=[
                pl.BlockSpec((1, s, 128), lambda n, c: (n, c, 0)),   # errors
                pl.BlockSpec((1, s, 128), lambda n, c: (n, c, 0)),   # labels
                pl.BlockSpec((1, 1, 128), lambda n, c: (n, 0, 0)),   # gts
                pl.BlockSpec((128, 128), lambda n, c: (0, 0)),       # U tri
                pl.BlockSpec((s, s), lambda n, c: (0, 0)),           # L tri
            ],
            out_specs=pl.BlockSpec((1, 1, 128), lambda n, c: (n, 0, 0)),
            scratch_shapes=[
                pltpu.VMEM((s, 128), jnp.float32),   # per-image contribution acc
                pltpu.VMEM((1, 128), jnp.float32),   # running label-count carry
            ],
        ),
        compiler_params=pltpu.CompilerParams(
            dimension_semantics=("parallel", "arbitrary"),
            vmem_limit_bytes=32 * 1024 * 1024),
        cost_estimate=pl.CostEstimate(
            flops=int(N * k * (2 * s * 128 * 128 + 2 * s * s * 128
                               + 40 * s * 128)),
            transcendentals=0,
            bytes_accessed=int((e3.size + g3.size + gts_b.size
                                + u_tri.size + l_tri.size + N * 128) * 4)),
    )(e3, g3, gts_b, u_tri, l_tri)

    per_image = jnp.sum(out, axis=(1, 2))              # (N,)
    return jnp.mean(per_image)


# ----------------------------- pure-JAX reference ---------------------------

def _lovasz_grad_ref(gt_sorted):
    gts = jnp.sum(gt_sorted)
    intersection = gts - jnp.cumsum(gt_sorted)
    union = gts + jnp.cumsum(1.0 - gt_sorted)
    jaccard = 1.0 - intersection / union
    return jnp.concatenate([jaccard[:1], jaccard[1:] - jaccard[:-1]])


def _lovasz_hinge_image_ref(logits, labels):
    signs = 2.0 * labels - 1.0
    errors = 1.0 - logits * signs
    order = jnp.argsort(-errors)
    errors_sorted = errors[order]
    gt_sorted = labels[order]
    grad = _lovasz_grad_ref(gt_sorted)
    return jnp.dot(jnp.maximum(errors_sorted, 0.0), grad)


def _reference(logits, target):
    """Mirror of lovasz_hinge(input.squeeze(1), target.squeeze(1), per_image=True)."""
    N = logits.shape[0]
    x = logits.reshape(N, -1).astype(jnp.float32)
    t = target.reshape(N, -1).astype(jnp.float32)
    return jnp.mean(jax.vmap(_lovasz_hinge_image_ref)(x, t))


if __name__ == "__main__":
    key = jax.random.PRNGKey(0)
    k1, k2 = jax.random.split(key)
    N, C, H, W = 2, 1, 16, 16
    logits = jax.random.normal(k1, (N, C, H, W), dtype=jnp.float32)
    target = (jax.random.uniform(k2, (N, C, H, W)) > 0.5).astype(jnp.float32)

    loss = jax.block_until_ready(lovasz_hinge_loss(logits, target))
    ref = _reference(logits, target)
    assert jnp.allclose(loss, ref, rtol=1e-3, atol=1e-5), (loss, ref)
    print("KERNEL_OK")
</pallas_src>

<mosaic_0001>
module attributes {stable_mosaic.version = 11 : i64} {
  func.func @_lovasz_kernel(%arg0: i32, %arg1: i32, %arg2: memref<1x8x128xf32, #tpu.memory_space<vmem>>, %arg3: memref<1x8x128xf32, #tpu.memory_space<vmem>>, %arg4: memref<1x1x128xf32, #tpu.memory_space<vmem>>, %arg5: memref<128x128xf32, #tpu.memory_space<vmem>>, %arg6: memref<8x8xf32, #tpu.memory_space<vmem>>, %arg7: memref<1x1x128xf32, #tpu.memory_space<vmem>>, %arg8: memref<8x128xf32, #tpu.memory_space<vmem>>, %arg9: memref<1x128xf32, #tpu.memory_space<vmem>>) attributes {dimension_semantics = [#tpu.dimension_semantics<parallel>, #tpu.dimension_semantics<arbitrary>], iteration_bounds = array<i64: 2, 1>, scalar_prefetch = 0 : i64, scratch_operands = 2 : i64, tpu.core_type = #tpu.core_type<tc>, window_params = [{transform_indices = @transform_0, window_bounds = array<i64: 1, 8, 128>}, {transform_indices = @transform_1, window_bounds = array<i64: 1, 8, 128>}, {transform_indices = @transform_2, window_bounds = array<i64: 1, 1, 128>}, {pipeline_mode = #tpu.pipeline_mode<synchronous>, transform_indices = @transform_3, window_bounds = array<i64: 128, 128>}, {pipeline_mode = #tpu.pipeline_mode<synchronous>, transform_indices = @transform_4, window_bounds = array<i64: 8, 8>}, {transform_indices = @transform_5, window_bounds = array<i64: 1, 1, 128>}]} {
    %c0_i32 = arith.constant 0 : i32
    %0 = arith.cmpi eq, %arg1, %c0_i32 : i32
    %1 = arith.extui %0 : i1 to i32
    %c0_i32_0 = arith.constant 0 : i32
    %2 = arith.cmpi ne, %1, %c0_i32_0 : i32
    scf.if %2 {
      %cst_32 = arith.constant 0.000000e+00 : f32
      %66 = vector.broadcast %cst_32 : f32 to vector<8x128xf32>
      %c0_33 = arith.constant 0 : index
      %c0_34 = arith.constant 0 : index
      %67 = vector.load %arg8[%c0_33, %c0_34] : memref<8x128xf32, #tpu.memory_space<vmem>>, vector<8x128xf32>
      tpu.vector_store %arg8[%c0_33, %c0_34], %66 {strides = array<i32>} : memref<8x128xf32, #tpu.memory_space<vmem>>, vector<8x128xf32>,
      %cst_35 = arith.constant 0.000000e+00 : f32
      %68 = vector.broadcast %cst_35 : f32 to vector<1x128xf32>
      %c0_36 = arith.constant 0 : index
      %c0_37 = arith.constant 0 : index
      %69 = vector.load %arg9[%c0_36, %c0_37] : memref<1x128xf32, #tpu.memory_space<vmem>>, vector<1x128xf32>
      tpu.vector_store %arg9[%c0_36, %c0_37], %68 {strides = array<i32>} : memref<1x128xf32, #tpu.memory_space<vmem>>, vector<1x128xf32>,
    } else {
    }
    %c0 = arith.constant 0 : index
    %c0_1 = arith.constant 0 : index
    %c0_2 = arith.constant 0 : index
    %3 = vector.load %arg2[%c0, %c0_1, %c0_2] : memref<1x8x128xf32, #tpu.memory_space<vmem>>, vector<1x8x128xf32>
    %4 = vector.shape_cast %3 : vector<1x8x128xf32> to vector<8x128xf32>
    %c0_3 = arith.constant 0 : index
    %c0_4 = arith.constant 0 : index
    %c0_5 = arith.constant 0 : index
    %5 = vector.load %arg3[%c0_3, %c0_4, %c0_5] : memref<1x8x128xf32, #tpu.memory_space<vmem>>, vector<1x8x128xf32>
    %6 = vector.shape_cast %5 : vector<1x8x128xf32> to vector<8x128xf32>
    %c0_6 = arith.constant 0 : index
    %c0_7 = arith.constant 0 : index
    %c0_8 = arith.constant 0 : index
    %7 = vector.load %arg4[%c0_6, %c0_7, %c0_8] : memref<1x1x128xf32, #tpu.memory_space<vmem>>, vector<1x1x128xf32>
    %8 = vector.shape_cast %7 : vector<1x1x128xf32> to vector<1x128xf32>
    %c0_9 = arith.constant 0 : index
    %c0_10 = arith.constant 0 : index
    %9 = vector.load %arg5[%c0_9, %c0_10] : memref<128x128xf32, #tpu.memory_space<vmem>>, vector<128x128xf32>
    %cst = arith.constant dense<0.000000e+00> : vector<8x128xf32>
    %10 = tpu.matmul %6, %9, %cst {dimension_numbers = #tpu.dot_dimension_numbers<[1], [0], [0], [1], [0, 0, 1, 1], [], []>} : vector<8x128xf32>, vector<128x128xf32>, vector<8x128xf32> -> vector<8x128xf32>
    %c0_11 = arith.constant 0 : index
    %c0_12 = arith.constant 0 : index
    %11 = vector.load %arg6[%c0_11, %c0_12] : memref<8x8xf32, #tpu.memory_space<vmem>>, vector<8x8xf32>
    %cst_13 = arith.constant dense<0.000000e+00> : vector<8x128xf32>
    %12 = tpu.matmul %11, %10, %cst_13 {dimension_numbers = #tpu.dot_dimension_numbers<[1], [0], [0], [1], [0, 0, 1, 1], [], []>} : vector<8x8xf32>, vector<8x128xf32>, vector<8x128xf32> -> vector<8x128xf32>
    %13 = vector.extract_strided_slice %12 {offsets = [0, 127], sizes = [8, 1], strides = [1, 1]} : vector<8x128xf32> to vector<8x1xf32>
    %14 = vector.broadcast %13 : vector<8x1xf32> to vector<8x128xf32>
    %15 = arith.addf %10, %14 : vector<8x128xf32>
    %c0_14 = arith.constant 0 : index
    %c0_15 = arith.constant 0 : index
    %16 = vector.load %arg9[%c0_14, %c0_15] : memref<1x128xf32, #tpu.memory_space<vmem>>, vector<1x128xf32>
    %17 = vector.broadcast %16 : vector<1x128xf32> to vector<8x128xf32>
    %18 = arith.addf %15, %17 : vector<8x128xf32>
    %19 = tpu.iota {dimensions = array<i32: 0>} : vector<8x128xi32>
    %20 = tpu.iota {dimensions = array<i32: 1>} : vector<8x128xi32>
    %c1024_i32 = arith.constant 1024 : i32
    %21 = arith.muli %arg1, %c1024_i32 : i32
    %c128_i32 = arith.constant 128 : i32
    %22 = vector.broadcast %c128_i32 : i32 to vector<8x128xi32>
    %23 = arith.muli %19, %22 : vector<8x128xi32>
    %24 = vector.broadcast %21 : i32 to vector<8x128xi32>
    %25 = arith.addi %24, %23 : vector<8x128xi32>
    %26 = arith.addi %25, %20 : vector<8x128xi32>
    %27 = arith.sitofp %26 : vector<8x128xi32> to vector<8x128xf32>
    %28 = vector.broadcast %8 : vector<1x128xf32> to vector<8x128xf32>
    %29 = arith.subf %28, %18 : vector<8x128xf32>
    %cst_16 = arith.constant 1.000000e+00 : f32
    %30 = vector.broadcast %cst_16 : f32 to vector<8x128xf32>
    %31 = arith.addf %27, %30 : vector<8x128xf32>
    %32 = vector.broadcast %8 : vector<1x128xf32> to vector<8x128xf32>
    %33 = arith.addf %32, %31 : vector<8x128xf32>
    %34 = arith.subf %33, %18 : vector<8x128xf32>
    %35 = arith.divf %29, %34 : vector<8x128xf32>
    %cst_17 = arith.constant 1.000000e+00 : f32
    %36 = vector.broadcast %cst_17 : f32 to vector<8x128xf32>
    %37 = arith.subf %36, %35 : vector<8x128xf32>
    %38 = arith.subf %18, %6 : vector<8x128xf32>
    %39 = vector.broadcast %8 : vector<1x128xf32> to vector<8x128xf32>
    %40 = arith.subf %39, %38 : vector<8x128xf32>
    %41 = vector.broadcast %8 : vector<1x128xf32> to vector<8x128xf32>
    %42 = arith.addf %41, %27 : vector<8x128xf32>
    %43 = arith.subf %42, %38 : vector<8x128xf32>
    %c0_i32_18 = arith.constant 0 : i32
    %44 = vector.broadcast %c0_i32_18 : i32 to vector<8x128xi32>
    %45 = arith.cmpi eq, %26, %44 : vector<8x128xi32>
    %46 = arith.divf %40, %43 : vector<8x128xf32>
    %cst_19 = arith.constant 1.000000e+00 : f32
    %47 = vector.broadcast %cst_19 : f32 to vector<8x128xf32>
    %48 = arith.subf %47, %46 : vector<8x128xf32>
    %cst_20 = arith.constant 0.000000e+00 : f32
    %49 = vector.broadcast %cst_20 : f32 to vector<8x128xf32>
    %50 = arith.select %45, %49, %48 : vector<8x128xi1>, vector<8x128xf32>
    %c0_21 = arith.constant 0 : index
    %c0_22 = arith.constant 0 : index
    %51 = vector.load %arg8[%c0_21, %c0_22] : memref<8x128xf32, #tpu.memory_space<vmem>>, vector<8x128xf32>
    %cst_23 = arith.constant 0.000000e+00 : f32
    %52 = vector.broadcast %cst_23 : f32 to vector<8x128xf32>
    %53 = arith.maximumf %4, %52 : vector<8x128xf32>
    %54 = arith.subf %37, %50 : vector<8x128xf32>
    %55 = arith.mulf %53, %54 : vector<8x128xf32>
    %56 = arith.addf %51, %55 : vector<8x128xf32>
    %c0_24 = arith.constant 0 : index
    %c0_25 = arith.constant 0 : index
    %57 = vector.load %arg8[%c0_24, %c0_25] : memref<8x128xf32, #tpu.memory_space<vmem>>, vector<8x128xf32>
    tpu.vector_store %arg8[%c0_24, %c0_25], %56 {strides = array<i32>} : memref<8x128xf32, #tpu.memory_space<vmem>>, vector<8x128xf32>,
    %c0_26 = arith.constant 0 : index
    %c0_27 = arith.constant 0 : index
    %58 = vector.load %arg9[%c0_26, %c0_27] : memref<1x128xf32, #tpu.memory_space<vmem>>, vector<1x128xf32>
    %59 = vector.extract_strided_slice %15 {offsets = [7, 127], sizes = [1, 1], strides = [1, 1]} : vector<8x128xf32> to vector<1x1xf32>
    %60 = vector.broadcast %59 : vector<1x1xf32> to vector<1x128xf32>
    %61 = arith.addf %58, %60 : vector<1x128xf32>
    %c0_28 = arith.constant 0 : index
    %c0_29 = arith.constant 0 : index
    %62 = vector.load %arg9[%c0_28, %c0_29] : memref<1x128xf32, #tpu.memory_space<vmem>>, vector<1x128xf32>
    tpu.vector_store %arg9[%c0_28, %c0_29], %61 {strides = array<i32>} : memref<1x128xf32, #tpu.memory_space<vmem>>, vector<1x128xf32>,
    %c0_i32_30 = arith.constant 0 : i32
    %63 = arith.cmpi eq, %arg1, %c0_i32_30 : i32
    %64 = arith.extui %63 : i1 to i32
    %c0_i32_31 = arith.constant 0 : i32
    %65 = arith.cmpi ne, %64, %c0_i32_31 : i32
    scf.if %65 {
      %c0_32 = arith.constant 0 : index
      %c0_33 = arith.constant 0 : index
      %66 = vector.load %arg8[%c0_32, %c0_33] : memref<8x128xf32, #tpu.memory_space<vmem>>, vector<8x128xf32>
      %cst_34 = arith.constant dense<0.000000e+00> : vector<128xf32>
      %67 = vector.multi_reduction <add>, %66, %cst_34 [0] : vector<8x128xf32> to vector<128xf32>
      %68 = vector.shape_cast %67 : vector<128xf32> to vector<1x128xf32>
      %c0_35 = arith.constant 0 : index
      %c0_36 = arith.constant 0 : index
      %c0_37 = arith.constant 0 : index
      %69 = vector.load %arg7[%c0_35, %c0_36, %c0_37] : memref<1x1x128xf32, #tpu.memory_space<vmem>>, vector<1x1x128xf32>
      %70 = vector.shape_cast %69 : vector<1x1x128xf32> to vector<1x128xf32>
      %71 = vector.shape_cast %68 : vector<1x128xf32> to vector<1x1x128xf32>
      tpu.vector_store %arg7[%c0_35, %c0_36, %c0_37], %71 {strides = array<i32>} : memref<1x1x128xf32, #tpu.memory_space<vmem>>, vector<1x1x128xf32>,
    } else {
    }
    return
  }
  func.func @transform_0(%arg0: i32, %arg1: i32) -> (i32, i32, i32) {
    %c0_i32 = arith.constant 0 : i32
    %c0_i32_0 = arith.constant 0 : i32
    return %arg0, %arg1, %c0_i32 : i32, i32, i32
  }
  func.func @transform_1(%arg0: i32, %arg1: i32) -> (i32, i32, i32) {
    %c0_i32 = arith.constant 0 : i32
    %c0_i32_0 = arith.constant 0 : i32
    return %arg0, %arg1, %c0_i32 : i32, i32, i32
  }
  func.func @transform_2(%arg0: i32, %arg1: i32) -> (i32, i32, i32) {
    %c0_i32 = arith.constant 0 : i32
    %c0_i32_0 = arith.constant 0 : i32
    %c0_i32_1 = arith.constant 0 : i32
    return %arg0, %c0_i32, %c0_i32_0 : i32, i32, i32
  }
  func.func @transform_3(%arg0: i32, %arg1: i32) -> (i32, i32) {
    %c0_i32 = arith.constant 0 : i32
    %c0_i32_0 = arith.constant 0 : i32
    %c0_i32_1 = arith.constant 0 : i32
    return %c0_i32, %c0_i32_0 : i32, i32
  }
  func.func @transform_4(%arg0: i32, %arg1: i32) -> (i32, i32) {
    %c0_i32 = arith.constant 0 : i32
    %c0_i32_0 = arith.constant 0 : i32
    %c0_i32_1 = arith.constant 0 : i32
    return %c0_i32, %c0_i32_0 : i32, i32
  }
  func.func @transform_5(%arg0: i32, %arg1: i32) -> (i32, i32, i32) {
    %c0_i32 = arith.constant 0 : i32
    %c0_i32_0 = arith.constant 0 : i32
    %c0_i32_1 = arith.constant 0 : i32
    return %arg0, %c0_i32, %c0_i32_0 : i32, i32, i32
  }
}

</mosaic_0001>

<bundles_post_ra>
// kernel: tpu_custom_call.1
= control target key start
LH: loop header
LB: loop body
LE: loop exit
PB: predicated region body
PF: predicated region fallthrough
CT: control target
= control target key end

     0   :  { %s1373_s0 = inlined_call_operand.hbm [shape: f32[2,8,128], index: 0, kind: input, shape index: {}]   ;;  %s1374_s1 = inlined_call_operand.hbm [shape: f32[2,8,128], index: 1, kind: input, shape index: {}]   ;;  %s1375_s2 = inlined_call_operand.vmem [shape: f32[2,1,128], index: 2, kind: input, shape index: {}]   ;;  %s1376_s3 = inlined_call_operand.hbm [shape: f32[128,128], index: 3, kind: input, shape index: {}]   ;;  %s1377_s4 = inlined_call_operand.vmem [shape: f32[8,8], index: 4, kind: input, shape index: {}]   ;;  %s1378_s5 = inlined_call_operand.hbm [shape: f32[2,1,128], index: 5, kind: output, shape index: {}]  }
   0x1   :  { %1385 = sst [smem:[#allocation18_spill]] %s1376_s3 }
   0x2   :  { %10 = vsyncpa [#allocation5], 0 }
   0x3   :  { %12 = vsyncpa [#allocation5 + $0x1], 0 }
   0x4   :  { %13 = vsyncpa [#allocation8], 0 }
   0x5   :  { %15 = vsyncpa [#allocation8 + $0x1], 0 }
   0x6   :  { %16 = vsyncpa [#allocation6], 0 }
   0x7   :  { %18 = vsyncpa [#allocation6 + $0x1], 0  ;;  %s1108_s18 = smov 0   ;;  %s1110_s19 = smov 0  }
   0x8   :  { %s1112_s20 = smov 0   ;;  %s1114_s21 = smov 0  }
   0x9   :  { %s1116_s22 = smov 0   ;;  %s1118_s23 = smov 0  }
   0xa LB: > { %1386 = sst [smem:[#allocation15_spill]] %s1062_s22  ;;  %s1139_s24 = sadd.s32 4294967295, %s1066_s23   ;;  %s1066_s23 = sphi %s1118_s23, %s24_s23   ;;  %s1062_s22 = sphi %s1116_s22, %s1407_s22   ;;  %s1058_s21 = sphi %s1114_s21, %s1406_s21   ;;  %s1054_s20 = sphi %s1112_s20, %s1410_s20   ;;  %s1050_s19 = sphi %s1110_s19, %s1409_s19   ;;  %s1046_s18 = sphi %s1108_s18, %s1408_s18  }
   0xb   : > { %s698_s25 = sadd.s32 4294967294, %s1066_s23   ;;  %p58_p0 = scmp.ne.s32.totalorder %s1050_s19, %s1046_s18 }
   0xc   : > { %p1379_p1 = scmp.eq.s32.totalorder %s1139_s24, 0  ;;  %p184_p3 = scmp.eq.s32.totalorder %s698_s25, 1 }
   0xd   : > { %p699_p5 = scmp.ge.s32.totalorder %s1066_s23, 1  ;;  %p191_p7 = scmp.lt.s32.totalorder %s1066_s23, 3 }
   0xe   : > { %p1148_p4 = por %p1379_p1, %p58_p0  ;;  %p1153_p6 = por %p184_p3, %p58_p0 }
   0xf   : > { %p1158_p8 = pnand %p699_p5, %p191_p7  ;;  %s1068_s29 = smov [#allocation9]  }
  0x10   : > { %s1387_s26 = scalar_select %p1148_p4, 1, 0 }
  0x11   : > { %s1388_s27 = scalar_select %p1153_p6, 1, 0 }
  0x12   : > { %s1389_s28 = scalar_select %p1158_p8, 1, 0 }
  0x13   : > { %s203_s30 = sshll.u32 %s1068_s29, 4  ;;  %p809_p9 = pneg %p1158_p8  ;;  %s204_s30 = int_to_ptr.vmem [resolvable:$true] %s203_s30 }
  0x14   : > { %s36_s7 = sadd.s32 1, %s1062_s22  ;;  %s1391_s3 = sld [smem:[#allocation18_spill]] }
  0x15   : > { %p1167_p11 = pnand %p809_p9, %p1379_p1 }
  0x17   : > { %p890_p13 = pneg %p1167_p11 }
  0x1a   : > { %s888_s10 = scalar_lea.hbm %s1391_s3, 2048 }
  0x1b   : > { %p889_p12 = scmp.ne.s32.totalorder %s1391_s3, %s888_s10  ;;  %p895_p5 = scmp.lt.u32.totalorder %s888_s10, %s1391_s3 }
  0x1d   : > { %p891_p0 = pnand %p890_p13, %p889_p12 }
  0x1f   : > { %p892_p3 = pneg %p891_p0 }
  0x21   : > { %p897_p7 = pnand %p895_p5, %p892_p3 }
  0x23   : > { %900 = shalt.err (!%p897_p7)
}
  0x24   : > { %s901_s15 = scalar_lea.vmem %s204_s30, 2048  ;;  %p909_p2 = scmp.lt.s32.totalorder %s204_s30, %s204_s30 }
  0x25   : > { %p902_p9 = scmp.ne.s32.totalorder %s204_s30, %s901_s15  ;;  %p910_p6 = scmp.lt.s32.totalorder %s901_s15, %s901_s15 }
  0x27   : > { %p904_p10 = pnand %p902_p9, %p890_p13  ;;  %p911_p4 = por %p910_p6, %p909_p2 }
  0x29   : > { %p905_p1 = pneg %p904_p10 }
  0x2b   : > { %p912_p8 = pnand %p911_p4, %p905_p1 }
  0x2d   : > { %915 = shalt.err (!%p912_p8)
}
  0x2e   : > { %s1069_s16 = smov 128   ;;  %s1070_s17 = smov 8  }
  0x2f   : > { %812 = dma.hbm_to_vmem [thread:$0]  (!%p1167_p11), %s1391_s3, 2048, %s204_s30, [#allocation8], %s1069_s16, %s1069_s16, %s1070_s17  }
  0x30   : > { %p38_p1 = scmp.ge.s32.totalorder %s36_s7, 2  ;;  %s45_s8 = sadd.s32 1, %s1054_s20 }
  0x31   : > { %p52_p2 = scmp.ne.s32.totalorder %s1054_s20, %s1050_s19  ;;  %p53_p4 = scmp.eq.s32.totalorder %s1066_s23, 0 }
  0x32   : > { %s1412_s7 = smov (%p38_p1, %s36_s7), 0  ;;  %p1394_p8 = scmp.eq.s32.totalorder %s1139_s24, 1 }
  0x33   : > { %1392 = sst [smem:[#allocation16_spill]] %s1412_s7  ;;  %p1194_p6 = por %p53_p4, %p52_p2 }
  0x34   : > { %p1200_p10 = por %p1394_p8, %p52_p2  ;;  %s40_s10 = ssub.s32 %s1062_s22, %s1412_s7 }
  0x35   : > { %p825_p11 = scmp.lt.s32.totalorder %s1066_s23, 2  ;;  %p43_p12 = scmp.eq.s32.totalorder %s40_s10, 0 }
  0x36   : > { %s1395_s6 = scalar_select %p1200_p10, 1, 0 }
  0x37   : > { %s220_s30 = sand.u32 1, %s1054_s20   ;;  %s703_s13 = sshll.u32 %s1062_s22, 7 }
  0x38   : > { %s1208_s11 = sshll.u32 %s220_s30, 3  ;;  %s1217_s16 = scalar_lea.hbm %s1373_s0, %s703_s13 }
  0x39   : > { %s1211_s12 = scalar_select %p43_p12, %s1054_s20, %s45_s8  }
  0x3a   : > { %s224_s17 = scalar_lea.vmem [#allocation4], %s1208_s11  ;;  %p1224_p13 = pnand %p825_p11, %p1194_p6 }
  0x3b   : > { %1396 = sst [smem:[#allocation17_spill]] %s1211_s12  ;;  %s232_s25 = sshll.u32 %s224_s17, 4  ;;  %s1220_s25 = int_to_ptr.vmem [resolvable:$true] %s232_s25 }
  0x3c   : > { %s1231_s14 = scalar_lea.hbm %s1374_s1, %s703_s13  ;;  %s239_s15 = sand.u32 1, %s1066_s23  }
  0x3d   : > { %s221_s3 = scalar_lea.sflag [#allocation5], %s220_s30  ;;  %s916_s7 = scalar_lea.hbm %s1217_s16, 128 }
  0x3e   : > { %p917_p0 = scmp.ne.s32.totalorder %s1217_s16, %s916_s7  ;;  %p918_p3 = pneg %p1224_p13 }
  0x3f   : > { %s921_s22 = scalar_lea.hbm %s1373_s0, 256  ;;  %p922_p9 = scmp.lt.u32.totalorder %s1217_s16, %s1373_s0 }
  0x40   : > { %p919_p5 = pnand %p918_p3, %p917_p0  ;;  %p923_p1 = scmp.lt.u32.totalorder %s921_s22, %s916_s7 }
  0x41   : > { %p925_p4 = scmp.lt.u32.totalorder %s916_s7, %s1217_s16 }
  0x42   : > { %p920_p7 = pneg %p919_p5  ;;  %p924_p2 = por %p923_p1, %p922_p9 }
  0x44   : > { %p926_p6 = por %p925_p4, %p924_p2 }
  0x46   : > { %p927_p8 = pnand %p926_p6, %p920_p7 }
  0x48   : > { %930 = shalt.err (!%p927_p8)
}
  0x49   : > { %s931_s30 = scalar_lea.vmem %s1220_s25, 128  ;;  %s1071_s13 = smov [#allocation4]  }
  0x4a   : > { %p932_p11 = scmp.ne.s32.totalorder %s1220_s25, %s931_s30  ;;  %s936_s10 = sshll.u32 %s1071_s13, 4  ;;  %s937_s10 = int_to_ptr.vmem [resolvable:$false] %s936_s10 }
  0x4b   : > { %s938_s12 = scalar_lea.vmem %s937_s10, 256  ;;  %p939_p5 = scmp.lt.s32.totalorder %s1220_s25, %s937_s10 }
  0x4c   : > { %p934_p12 = pnand %p932_p11, %p918_p3  ;;  %p940_p9 = scmp.lt.s32.totalorder %s938_s12, %s931_s30 }
  0x4e   : > { %p935_p0 = pneg %p934_p12  ;;  %p941_p1 = por %p940_p9, %p939_p5 }
  0x50   : > { %p942_p2 = pnand %p941_p1, %p935_p0 }
  0x52   : > { %945 = shalt.err (!%p942_p2)
}
  0x53   : > { %816 = dma.hbm_to_vmem [thread:$0]  (!%p1224_p13), %s1217_s16, 128, %s1220_s25, %s221_s3  }
  0x54   : > { %s243_s22 = scalar_lea.vmem [#allocation7], %s1208_s11  ;;  %s240_s9 = scalar_lea.sflag [#allocation8], %s239_s15 }
  0x55   : > { %s251_s7 = sshll.u32 %s243_s22, 4  ;;  %s946_s17 = scalar_lea.hbm %s1231_s14, 128  ;;  %s252_s7 = int_to_ptr.vmem [resolvable:$true] %s251_s7 }
  0x56   : > { %p947_p7 = scmp.ne.s32.totalorder %s1231_s14, %s946_s17  ;;  %s951_s13 = scalar_lea.hbm %s1374_s1, 256 }
  0x57   : > { %p952_p8 = scmp.lt.u32.totalorder %s1231_s14, %s1374_s1  ;;  %p953_p11 = scmp.lt.u32.totalorder %s951_s13, %s946_s17 }
  0x58   : > { %p949_p4 = pnand %p947_p7, %p918_p3  ;;  %p955_p0 = scmp.lt.u32.totalorder %s946_s17, %s1231_s14 }
  0x59   : > { %p954_p12 = por %p953_p11, %p952_p8 }
  0x5a   : > { %p950_p6 = pneg %p949_p4 }
  0x5b   : > { %p956_p5 = por %p955_p0, %p954_p12 }
  0x5d   : > { %p957_p9 = pnand %p956_p5, %p950_p6 }
  0x5f   : > { %960 = shalt.err (!%p957_p9)
}
  0x60   : > { %s961_s3 = scalar_lea.vmem %s252_s7, 128  ;;  %s1072_s11 = smov [#allocation7]  }
  0x61   : > { %p962_p1 = scmp.ne.s32.totalorder %s252_s7, %s961_s3  ;;  %s966_s16 = sshll.u32 %s1072_s11, 4  ;;  %s967_s16 = int_to_ptr.vmem [resolvable:$false] %s966_s16 }
  0x62   : > { %s968_s25 = scalar_lea.vmem %s967_s16, 256  ;;  %p969_p4 = scmp.lt.s32.totalorder %s252_s7, %s967_s16 }
  0x63   : > { %p964_p2 = pnand %p962_p1, %p918_p3  ;;  %p970_p10 = scmp.lt.s32.totalorder %s968_s25, %s961_s3 }
  0x65   : > { %p965_p7 = pneg %p964_p2  ;;  %p971_p8 = por %p970_p10, %p969_p4 }
  0x67   : > { %p972_p11 = pnand %p971_p8, %p965_p7 }
  0x69   : > { %975 = shalt.err (!%p972_p11)
}
  0x6a   : > { %819 = dma.hbm_to_vmem [thread:$0]  (!%p1224_p13), %s1231_s14, 128, %s252_s7, %s240_s9  }
  0x6b   : > { %p1398_p6 = scmp.ne.s32.totalorder %s1389_s28, 0 }
  0x6c   : > { %s1284_s15 = sand.u32 (!%p1398_p6), 1, %s1050_s19   ;;  %p1399_p10 = scmp.ne.s32.totalorder (!%p1398_p6), %s1387_s26, 0 }
  0x6d   : > { %266 = sbr.rel (%p1398_p6) target bundleno = 845 (0x34d), region = 40  ;;  %s707_s22 = sshll.u32 (!%p1398_p6), %s1284_s15, 3 }
  0x6e   : > { %s269_s17 = scalar_lea.sflag (!%p1398_p6), [#allocation5], %s1284_s15  ;;  %s1288_s8 = scalar_lea.vmem (!%p1398_p6), [#allocation4], %s707_s22 }
  0x74   : > { %1029 = dma.done.wait (%p1399_p10), %s269_s17, 128  }
  0x75   : > { %1031 = vsyncadd (%p1399_p10), %s269_s17, 4294967168  ;;  %s277_s29 = sand.u32 1, %s1139_s24   ;;  %s1295_s14 = scalar_lea.vmem [#allocation7], %s707_s22 }
  0x76   : > { %s278_s28 = scalar_lea.sflag [#allocation8], %s277_s29 }
  0x77   : > { %1033 = dma.done.wait (%p1399_p10), %s278_s28, 128  }
  0x78   : > { %1035 = vsyncadd (%p1399_p10), %s278_s28, 4294967168  ;;  %p1400_p13 = scmp.eq.s32.totalorder %s1139_s24, 0 }
  0x7a   : > { %1037 = dma.done.wait (%p1400_p13), [#allocation8], 2048   ;;  %p1401_p3 = pmov %p1400_p13 }
  0x7b   : > { %v1073_v0 = vmov 0.0|0.0   ;;  %v1074_v1 = vmov 0.0   ;;  %vm1075_vm0 = vmmov 0   ;;  %v331_v2 = vld [vmem:[#allocation9] sm:$0xff]  ;;  %v332_v3 = vld [vmem:[#allocation9 + $0x8] sm:$0xff]  ;;  %v333_v4 = vld [vmem:[#allocation9 + $0x10] sm:$0xff]  ;;  %v506_v33 = vlaneseq }
  0x7c   : > { %1039 = vsyncadd (%p1401_p3), [#allocation8], 4294965248  ;;  %775 = vmatprep.subr.bf16.mxu0 %v1073_v0  ;;  %327 = vst [vmem:[#allocation3] sm:$0x1] %v1074_v1  ;;  %767 = vmatprep.mubr.msk.f32.mxu0 %vm1075_vm0, %v1074_v1  ;;  %v776_v5 = vpack.c.bf16 %v332_v3, %v331_v2  ;;  %v334_v6 = vld [vmem:[#allocation9 + $0x18] sm:$0xff]  ;;  %v335_v8 = vld [vmem:[#allocation9 + $0x20] sm:$0xff] }
  0x7d   : > { %770 = vmatprep.subr.mxu1 %v1074_v1  ;;  %772 = vmatprep.mubr.msk.f32.mxu1 %vm1075_vm0, %v1074_v1  ;;  %v779_v7 = vpack.c.bf16 %v334_v6, %v333_v4  ;;  %v336_v9 = vld [vmem:[#allocation9 + $0x28] sm:$0xff]  ;;  %v337_v11 = vld [vmem:[#allocation9 + $0x30] sm:$0xff]  ;;  %v338_v12 = vld [vmem:[#allocation9 + $0x38] sm:$0xff]  ;;  %v1076_v27 = vmov 127   ;;  %vm418_vm1 = vcmask 64512   ;;  %v1309_v34 = vshrl.u32 %v506_v33, 7 }
  0x7e   : > { %777 = vmatpush3.bf16.msra.mxu0 %v776_v5  ;;  %v782_v10 = vpack.c.bf16 %v336_v9, %v335_v8  ;;  %v785_v13 = vpack.c.bf16 %v338_v12, %v337_v11  ;;  %v339_v14 = vld [vmem:[#allocation9 + $0x40] sm:$0xff]  ;;  %v340_v15 = vld [vmem:[#allocation9 + $0x48] sm:$0xff]  ;;  %v341_v17 = vld [vmem:[#allocation9 + $0x50] sm:$0xff]  ;;  %883 = vset.pattern.permute.xlu0 %v1076_v27  ;;  %v509_v35 = vand.u32 127, %v506_v33  ;;  %p319_p12 = scmp.lt.s32.totalorder %s1058_s21, 1  ;;  %s713_s10 = sshll.u32 %s1058_s21, 4 }
  0x7f   : > { %778 = vmatprep.subr.bf16.mxu0 %v1073_v0  ;;  %v788_v16 = vpack.c.bf16 %v340_v15, %v339_v14  ;;  %v342_v18 = vld [vmem:[#allocation9 + $0x58] sm:$0xff]  ;;  %v343_v20 = vld [vmem:[#allocation9 + $0x60] sm:$0xff]  ;;  %v344_v21 = vld [vmem:[#allocation9 + $0x68] sm:$0xff]  ;;  %v511_v36 = vmul.u32 128, %v1309_v34  ;;  %s318_s12 = scalar_lea.vmem [#allocation10], %s1284_s15  ;;  %s1323_s25 = scalar_lea.hbm %s1378_s5, %s713_s10 }
  0x80   : > { %v791_v19 = vpack.c.bf16 %v342_v18, %v341_v17  ;;  %v794_v22 = vpack.c.bf16 %v344_v21, %v343_v20  ;;  %v345_v23 = vld [vmem:[#allocation9 + $0x70] sm:$0xff]  ;;  %v346_v24 = vld [vmem:[#allocation9 + $0x78] sm:$0xff]  ;;  %s320_s7 = scalar_select %p319_p12, %s1058_s21, 1  ;;  %v328_v55 = vld [vmem:[%s1288_s8] sm:$0xff] }
  0x81   : > { %v797_v25 = vpack.c.bf16 %v346_v24, %v345_v23  ;;  %v329_v26 = vld [vmem:[%s1295_s14] sm:$0xff]  ;;  %v514_v37 = vadd.s32 %v511_v36, %v509_v35  ;;  %v539_v59 = vmax.f32 %v328_v55, 0.0  ;;  %s580_s3 = sshll.u32 %s318_s12, 4  ;;  %s568_s22 = scalar_lea.sflag [#allocation6], %s1284_s15  ;;  %s1325_s3 = int_to_ptr.vmem [resolvable:$true] %s580_s3 }
  0x82   : > { %780 = vmatpush3.bf16.msra.mxu0 %v779_v7  ;;  %v417_v28 = vld [vmem:[%s1377_s4] sm:$0xff]  ;;  %s321_s13 = scalar_lea.vmem %s1375_s2, %s320_s7  ;;  %s976_s17 = scalar_lea.vmem %s1325_s3, 16 }
  0x83   : > { %781 = vmatprep.subr.bf16.mxu0 %v1073_v0  ;;  %v515_v38 = vcvt.s32.f32 %v514_v37  ;;  %v712_v40 = vld [vmem:[%s321_s13] ss:$0 sm:$0xff]  ;;  %vm533_vm2 = vcmp.eq.s32.totalorder %v514_v37, 0  ;;  %p977_p0 = scmp.ne.s32.totalorder %s1325_s3, %s976_s17  ;;  %p1402_p5 = scmp.ne.s32.totalorder %s1395_s6, 0 }
  0x84   : > { %v711_v42 = vld [vmem:[#allocation3] ss:$0 sm:$0xff]  ;;  %s1077_s21 = smov [#allocation10]  }
  0x85   : > { %v523_v39 = vadd.f32 1.0, %v515_v38  ;;  %v531_v46 = vadd.f32 %v712_v40, %v515_v38  ;;  %p978_p9 = pnand %p977_p0, %p1402_p5  ;;  %s980_s8 = sshll.u32 %s1077_s21, 4  ;;  %s981_s8 = int_to_ptr.vmem [resolvable:$false] %s980_s8 }
  0x86   : > { %783 = vmatpush3.bf16.msra.mxu0 %v782_v10  ;;  %s982_s29 = scalar_lea.vmem %s981_s8, 32  ;;  %p983_p2 = scmp.lt.s32.totalorder %s1325_s3, %s981_s8 }
  0x87   : > { %784 = vmatprep.subr.bf16.mxu0 %v1073_v0  ;;  %v524_v44 = vadd.f32 %v712_v40, %v523_v39  ;;  %p979_p1 = pneg %p978_p9  ;;  %p984_p7 = scmp.lt.s32.totalorder %s982_s29, %s976_s17 }
  0x89   : > { %p985_p4 = por %p984_p7, %p983_p2 }
  0x8a   : > { %786 = vmatpush3.bf16.msra.mxu0 %v785_v13 }
  0x8b   : > { %787 = vmatprep.subr.bf16.mxu0 %v1073_v0  ;;  %p986_p8 = pnand %p985_p4, %p979_p1 }
  0x8e   : > { %789 = vmatpush3.bf16.msra.mxu0 %v788_v16 }
  0x8f   : > { %790 = vmatprep.subr.bf16.mxu0 %v1073_v0 }
  0x92   : > { %792 = vmatpush3.bf16.msra.mxu0 %v791_v19 }
  0x93   : > { %793 = vmatprep.subr.bf16.mxu0 %v1073_v0 }
  0x96   : > { %795 = vmatpush3.bf16.msra.mxu0 %v794_v22 }
  0x97   : > { %796 = vmatprep.subr.bf16.mxu0 %v1073_v0 }
  0x9a   : > { %798 = vmatpush3.bf16.msra.mxu0 %v797_v25 }
  0x9d   : > { %768 = vmatmul.mubr.f32.vlgmr.msra.gmra.mrb[0].mxu0 %v329_v26 }
 0x170   : > { %v413_v29 = vpop.f32.mrb[0].mxu0 }
 0x171   : > { %v769_v30 = vpop.f32.mrb[1].mxu0  ;;  %771 = vmatpush3.msra.mxu1 %v413_v29 }
 0x172   : > { %773 = vmatmul.mubr.msk.f32.vlgmr.msra.gmra.mrb[0].mxu1 %vm418_vm1, %v417_v28 }
 0x245   : > { %v488_v31 = vpop.f32.mrb[0].mxu1 }
 0x246   : > { %494 = vperm.xlu0 %883, %v488_v31   ;;  %v774_v32 = vpop.f32.mrb[1].mxu1 }
 0x2c5   : > { %v495_v41 = vpop.permute.xlu0 %494 }
 0x2c6   : > { %v497_v43 = vadd.f32 %v495_v41, %v413_v29 }
 0x2c8   : > { %v505_v45 = vadd.f32 %v711_v42, %v497_v43  ;;  %547 = vperm.xlu0 %883, %v497_v43  }
 0x2ca   : > { %v529_v47 = vsub.f32 %v505_v45, %v329_v26  ;;  %v525_v48 = vsub.f32 %v524_v44, %v505_v45  ;;  %v522_v51 = vsub.f32 %v712_v40, %v505_v45 }
 0x2cc   : > { %884 = vrcp.f32 %v525_v48  ;;  %v532_v49 = vsub.f32 %v531_v46, %v529_v47  ;;  %v530_v52 = vsub.f32 %v712_v40, %v529_v47 }
 0x2ce   : > { %886 = vrcp.f32 %v532_v49 }
 0x2d6   : > { %v885_v50 = vpop.eup %884 }
 0x2d7   : > { %v527_v54 = vmul.f32 %v885_v50, %v522_v51 }
 0x2d8   : > { %v887_v53 = vpop.eup %886 }
 0x2d9   : > { %v535_v56 = vmul.f32 %v887_v53, %v530_v52  ;;  %v528_v58 = vsub.f32 1.0, %v527_v54 }
 0x2db   : > { %v536_v57 = vsub.f32 1.0, %v535_v56 }
 0x2dd   : > { %v537_v60 = vsel %vm533_vm2, 0.0, %v536_v57 }
 0x2de   : > { %v540_v61 = vsub.f32 %v528_v58, %v537_v60 }
 0x2e0   : > { %v541_v62 = vmul.f32 %v540_v61, %v539_v59 }
 0x2e2   : > { %v560_v63 = vrot.slane %v541_v62, 4 }
 0x2e4   : > { %v561_v0 = vadd.f32 %v560_v63, %v541_v62 }
 0x2e6   : > { %v562_v1 = vrot.slane %v561_v0, 2 }
 0x2e8   : > { %v563_v2 = vadd.f32 %v562_v1, %v561_v0 }
 0x2ea   : > { %v564_v3 = vrot.slane %v563_v2, 1 }
 0x2ec   : > { %v565_v4 = vadd.f32 %v564_v3, %v563_v2 }
 0x2ee   : > { %566 = vst [vmem:[%s318_s12] sm:$0x1] %v565_v4 }
 0x2ef   : > { %989 = shalt.err (!%p986_p8)
}
 0x2f0   : > { %s990_s15 = scalar_lea.hbm %s1323_s25, 16  ;;  %s994_s24 = scalar_lea.hbm %s1378_s5, 32 }
 0x2f1   : > { %p991_p11 = scmp.ne.s32.totalorder %s1323_s25, %s990_s15  ;;  %p995_p13 = scmp.lt.u32.totalorder %s1323_s25, %s1378_s5 }
 0x2f2   : > { %p996_p3 = scmp.lt.u32.totalorder %s994_s24, %s990_s15  ;;  %p998_p0 = scmp.lt.u32.totalorder %s990_s15, %s1323_s25 }
 0x2f3   : > { %p992_p6 = pnand %p991_p11, %p1402_p5 }
 0x2f4   : > { %p997_p12 = por %p996_p3, %p995_p13 }
 0x2f5   : > { %p993_p10 = pneg %p992_p6 }
 0x2f6   : > { %p999_p9 = por %p998_p0, %p997_p12 }
 0x2f8   : > { %p1000_p1 = pnand %p999_p9, %p993_p10 }
 0x2fa   : > { %1003 = shalt.err (!%p1000_p1)
}
 0x2fb   : > { %807 = dma.vmem_to_hbm [thread:$0]  (%p1402_p5), %s1325_s3, 16, %s1323_s25, %s568_s22   ;;  %v551_v5 = vsub.s32 7, %v1309_v34  ;;  %v544_v7 = vld [vmem:[#allocation3] sm:$0x1] }
 0x347   : > { %v548_v6 = vpop.permute.xlu0 %547 }
 0x348   : > { %v552_v8 = vrot.slane %v548_v6, %v551_v5 }
 0x34a   : > { %v554_v9 = vadd.f32 %v552_v8, %v544_v7 }
 0x34c   : > { %555 = vst [vmem:[#allocation3] sm:$0x1] %v554_v9 }
 0x34d PF: > { %s592_s9 = sand.u32 1, %s1046_s18   ;;  %p1403_p2 = scmp.ne.s32.totalorder %s1388_s27, 0 }
 0x34e   : > { %p1404_p7 = scmp.ge.s32.totalorder %s1066_s23, 2  ;;  %s593_s30 = scalar_lea.sflag [#allocation6], %s592_s9 }
 0x350   : > { %p821_p4 = pnand %p1404_p7, %p1403_p2 }
 0x352   : > { %1041 = dma.done.wait (!%p821_p4), %s593_s30, 16  }
 0x353   : > { %1043 = vsyncadd (!%p821_p4), %s593_s30, 4294967280  ;;  %s24_s23 = sadd.s32 1, %s1066_s23   ;;  %s1405_s6 = sld [smem:[#allocation17_spill]] }
 0x354   : > { %p21_p5 = scmp.ge.s32.totalorder %s24_s23, 4   ;;  %s1406_s21 = sld [smem:[#allocation15_spill]] }
 0x355   : > { %s1407_s22 = sld [smem:[#allocation16_spill]]  ;;  %s1408_s18 = smov %s1050_s19 }
 0x356   : > { %s1409_s19 = smov %s1054_s20  ;;  %23 = sbr.rel (!%p21_p5) target bundleno = 10 (0xa), region = 113 }
 0x359   : > { %s1410_s20 = smov %s1405_s6 }
 0x35d   :  { %597 = vsyncpa [#allocation5], 1 }
 0x35e   :  { %599 = vsyncpa [#allocation5 + $0x1], 1 }
 0x35f   :  { %600 = vsyncpa [#allocation8], 1 }
 0x360   :  { %602 = vsyncpa [#allocation8 + $0x1], 1 }
 0x361   :  { %603 = vsyncpa [#allocation6], 1 }
 0x362   :  { %605 = vsyncpa [#allocation6 + $0x1], 1 }

</bundles_post_ra>
